<compile_context>
chip_gen: v5e
topology: v5e:2x2
jax: 0.10.0
libtpu: 0.0.40
codegen_flags: <defaults>
</compile_context>

<pallas_src>
import jax
import jax.numpy as jnp
from jax import lax
from jax.experimental import pallas as pl
from jax.experimental.pallas import tpu as pltpu


LANE = 128
SUBLANE = 8


def _round_up(x, m):
    return ((x + m - 1) // m) * m


# ----------------------------- fused Pallas kernel ---------------------------

def _make_fused_kernel(num_layers, alpha, k):
    alpha = float(alpha)
    k = int(k)

    def kernel(*refs):
        # refs = [a_ref, x_ref, w0, b0, ..., w_{L-1}, b_{L-1}, o_ref]
        a_ref, x_ref = refs[0], refs[1]
        o_ref = refs[-1]
        wb = refs[2:-1]

        # ---- MLP feature transform (all layers fused, h stays in vregs) ----
        h = x_ref[...].astype(jnp.float32)
        for i in range(num_layers):
            w = wb[2 * i][...]          # bf16 [Fin_p, Fout_p]
            b = wb[2 * i + 1][...]      # f32  [1, Fout_p]
            y = jnp.dot(h.astype(w.dtype), w,
                        preferred_element_type=jnp.float32) + b
            h = jnp.maximum(y, 0.0) if i < num_layers - 1 else y

        # ---- APPNP propagation: h <- (1-alpha) A_hat h + alpha h0, k times --
        ah0 = alpha * h                                           # hoisted
        a_scaled = (a_ref[...].astype(jnp.float32)
                    * (1.0 - alpha)).astype(jnp.bfloat16)         # hoisted

        def prop_body(_, h_carry):
            ah = jnp.dot(a_scaled, h_carry.astype(jnp.bfloat16),
                         preferred_element_type=jnp.float32)
            return ah + ah0

        h = lax.fori_loop(0, k, prop_body, h, unroll=True)

        o_ref[...] = h.astype(o_ref.dtype)

    return kernel


# ------------------------------- host wrapper --------------------------------

def appnp_forward(a_hat, features, params, *, alpha, k):
    """Full APPNP forward: fused MLP + propagation in one pallas_call.

    a_hat   : [N, N]    f32 normalized adjacency
    features: [N, Fin]  f32 node features
    params  : list of (w [Fin, Fout], b [1, Fout]) f32
    """
    N, Fin = features.shape
    n_classes = params[-1][0].shape[1]
    num_layers = len(params)

    # Pad the node dimension to a lane multiple so A_hat (whose last dim is N)
    # and the matmul contraction dims are fully lane-dense / unmasked.
    Np = _round_up(N, LANE)
    Fin_p = _round_up(Fin, LANE)

    # Pad inputs (zeros are semantically inert — see correctness note below).
    x_p = jnp.zeros((Np, Fin_p), jnp.float32).at[:N, :Fin].set(features)
    a_p = jnp.zeros((Np, Np), jnp.bfloat16).at[:N, :N].set(
        a_hat.astype(jnp.bfloat16))

    padded = []
    prev = Fin_p
    for w, b in params:
        fi, fo = w.shape
        fo_p = _round_up(fo, LANE)
        w_p = jnp.zeros((prev, fo_p), jnp.bfloat16).at[:fi, :fo].set(
            w.astype(jnp.bfloat16))
        b_p = jnp.zeros((1, fo_p), jnp.float32).at[:, :fo].set(b)
        padded.append((w_p, b_p))
        prev = fo_p
    C_p = prev

    kernel = _make_fused_kernel(num_layers, alpha, k)

    in_specs = [
        pl.BlockSpec((Np, Np), lambda i: (0, 0)),        # A_hat
        pl.BlockSpec((Np, Fin_p), lambda i: (0, 0)),     # features
    ]
    flat_wb = []
    for w_p, b_p in padded:
        in_specs.append(pl.BlockSpec(w_p.shape, lambda i: (0, 0)))
        in_specs.append(pl.BlockSpec(b_p.shape, lambda i: (0, 0)))
        flat_wb += [w_p, b_p]

    # Advisory cost estimate.
    flops = 2 * Np * Np * C_p * int(k)
    d = Fin_p
    for w_p, _ in padded:
        flops += 2 * Np * d * w_p.shape[1]
        d = w_p.shape[1]
    bytes_accessed = (a_p.size * 2 + x_p.size * 4
                      + sum(w.size * 2 + b.size * 4 for w, b in padded)
                      + Np * C_p * 4)

    out_p = pl.pallas_call(
        kernel,
        out_shape=jax.ShapeDtypeStruct((Np, C_p), jnp.float32),
        grid=(1,),
        in_specs=in_specs,
        out_specs=pl.BlockSpec((Np, C_p), lambda i: (0, 0)),
        compiler_params=pltpu.CompilerParams(
            dimension_semantics=("arbitrary",)),
        cost_estimate=pl.CostEstimate(
            flops=flops, transcendentals=0, bytes_accessed=bytes_accessed),
    )(a_p, x_p, *flat_wb)

    # Padding correctness: padded columns of A_hat are zero, so real rows never
    # read padded h rows (whose values pick up the bias via relu(b)); padded
    # class columns of the last layer's weight/bias are zero only where sliced
    # away anyway. Slice back to the logical shape.
    return out_p[:N, :n_classes]


# --------------------------- parameter / graph setup -------------------------

def init_linear_params(key, fan_in, fan_out, dtype=jnp.float32):
    # Mimics nn.Linear.reset_parameters (uniform +/- 1/sqrt(fan_in)).
    kw, kb = jax.random.split(key)
    bound = 1.0 / (fan_in ** 0.5)
    w = jax.random.uniform(kw, (fan_in, fan_out), dtype, -bound, bound)
    b = jax.random.uniform(kb, (1, fan_out), dtype, -bound, bound)
    return w, b


def build_appnp_params(key, num_layers, in_feats, hiddens, n_classes):
    params = []
    keys = jax.random.split(key, num_layers)
    for i in range(num_layers):
        if i == 0:
            fi, fo = in_feats, hiddens
        elif i == num_layers - 1:
            fi, fo = hiddens, n_classes
        else:
            fi, fo = hiddens, hiddens
        params.append(init_linear_params(keys[i], fi, fo))
    return params


def build_normalized_adjacency(key, n_nodes, p_edge=0.1, dtype=jnp.float32):
    # Random symmetric graph; A_hat = D^{-1/2} A D^{-1/2}, degree clamped >= 1.
    a = (jax.random.uniform(key, (n_nodes, n_nodes)) < p_edge).astype(dtype)
    a = jnp.maximum(a, a.T)
    a = a * (1.0 - jnp.eye(n_nodes, dtype=dtype))  # no self loops
    deg = jnp.clip(a.sum(axis=1), 1.0, None)
    d_inv_sqrt = 1.0 / jnp.sqrt(deg)
    return (d_inv_sqrt[:, None] * a) * d_inv_sqrt[None, :]


# ---------------------------------- main --------------------------------------

if __name__ == "__main__":
    N_NODES = 64
    IN_FEATS = 32
    HIDDENS = 32
    N_CLASSES = 16
    NUM_LAYERS = 3
    ALPHA = 0.1
    K = 3

    root = jax.random.PRNGKey(0)
    k_feat, k_graph, k_params = jax.random.split(root, 3)

    features = jax.random.normal(k_feat, (N_NODES, IN_FEATS), jnp.float32)
    a_hat = build_normalized_adjacency(k_graph, N_NODES)
    params = build_appnp_params(k_params, NUM_LAYERS, IN_FEATS, HIDDENS, N_CLASSES)

    out = appnp_forward(a_hat, features, params, alpha=ALPHA, k=K)
    out = jax.block_until_ready(out)

    assert out.shape == (N_NODES, N_CLASSES)
    assert jnp.all(jnp.isfinite(out))

    # Pure-JAX reference mirroring the kernel's bf16 operands / f32 accumulation.
    h = features
    for i, (w, b) in enumerate(params):
        y = jnp.dot(h.astype(jnp.bfloat16), w.astype(jnp.bfloat16),
                    preferred_element_type=jnp.float32) + b
        h = jnp.maximum(y, 0.0) if i < NUM_LAYERS - 1 else y
    h0 = h
    ah0 = ALPHA * h0
    a_scaled_ref = (a_hat.astype(jnp.bfloat16).astype(jnp.float32)
                    * (1.0 - ALPHA)).astype(jnp.bfloat16)
    for _ in range(K):
        h = jnp.dot(a_scaled_ref, h.astype(jnp.bfloat16),
                    preferred_element_type=jnp.float32) + ah0
    assert jnp.allclose(out, h, atol=2e-3, rtol=2e-3), \
        float(jnp.max(jnp.abs(out - h)))

    # Loose sanity check against the full-f32 math (bf16 mantissa loss only).
    hf = features
    for i, (w, b) in enumerate(params):
        y = hf @ w + b
        hf = jnp.maximum(y, 0.0) if i < NUM_LAYERS - 1 else y
    hf0 = hf
    for _ in range(K):
        hf = (1.0 - ALPHA) * (a_hat @ hf) + ALPHA * hf0
    assert jnp.allclose(out, hf, atol=5e-2, rtol=5e-2)

    print("KERNEL_OK")
</pallas_src>

<mosaic_0001>
module attributes {stable_mosaic.version = 11 : i64} {
  func.func @kernel(%arg0: i32, %arg1: memref<128x128xbf16, #tpu.memory_space<vmem>>, %arg2: memref<128x128xf32, #tpu.memory_space<vmem>>, %arg3: memref<128x128xbf16, #tpu.memory_space<vmem>>, %arg4: memref<1x128xf32, #tpu.memory_space<vmem>>, %arg5: memref<128x128xbf16, #tpu.memory_space<vmem>>, %arg6: memref<1x128xf32, #tpu.memory_space<vmem>>, %arg7: memref<128x128xbf16, #tpu.memory_space<vmem>>, %arg8: memref<1x128xf32, #tpu.memory_space<vmem>>, %arg9: memref<128x128xf32, #tpu.memory_space<vmem>>) attributes {dimension_semantics = [#tpu.dimension_semantics<arbitrary>], iteration_bounds = array<i64: 1>, scalar_prefetch = 0 : i64, scratch_operands = 0 : i64, tpu.core_type = #tpu.core_type<tc>, window_params = [{pipeline_mode = #tpu.pipeline_mode<synchronous>, transform_indices = @transform_0, window_bounds = array<i64: 128, 128>}, {pipeline_mode = #tpu.pipeline_mode<synchronous>, transform_indices = @transform_1, window_bounds = array<i64: 128, 128>}, {pipeline_mode = #tpu.pipeline_mode<synchronous>, transform_indices = @transform_2, window_bounds = array<i64: 128, 128>}, {pipeline_mode = #tpu.pipeline_mode<synchronous>, transform_indices = @transform_3, window_bounds = array<i64: 1, 128>}, {pipeline_mode = #tpu.pipeline_mode<synchronous>, transform_indices = @transform_4, window_bounds = array<i64: 128, 128>}, {pipeline_mode = #tpu.pipeline_mode<synchronous>, transform_indices = @transform_5, window_bounds = array<i64: 1, 128>}, {pipeline_mode = #tpu.pipeline_mode<synchronous>, transform_indices = @transform_6, window_bounds = array<i64: 128, 128>}, {pipeline_mode = #tpu.pipeline_mode<synchronous>, transform_indices = @transform_7, window_bounds = array<i64: 1, 128>}, {pipeline_mode = #tpu.pipeline_mode<synchronous>, transform_indices = @transform_8, window_bounds = array<i64: 128, 128>}]} {
    %c0 = arith.constant 0 : index
    %c0_0 = arith.constant 0 : index
    %0 = vector.load %arg2[%c0, %c0_0] : memref<128x128xf32, #tpu.memory_space<vmem>>, vector<128x128xf32>
    %c0_1 = arith.constant 0 : index
    %c0_2 = arith.constant 0 : index
    %1 = vector.load %arg3[%c0_1, %c0_2] : memref<128x128xbf16, #tpu.memory_space<vmem>>, vector<128x128xbf16>
    %c0_3 = arith.constant 0 : index
    %c0_4 = arith.constant 0 : index
    %2 = vector.load %arg4[%c0_3, %c0_4] : memref<1x128xf32, #tpu.memory_space<vmem>>, vector<1x128xf32>
    %3 = arith.truncf %0 : vector<128x128xf32> to vector<128x128xbf16>
    %cst = arith.constant dense<0.000000e+00> : vector<128x128xf32>
    %4 = tpu.matmul %3, %1, %cst {dimension_numbers = #tpu.dot_dimension_numbers<[1], [0], [0], [1], [0, 0, 1, 1], [], []>} : vector<128x128xbf16>, vector<128x128xbf16>, vector<128x128xf32> -> vector<128x128xf32>
    %5 = vector.broadcast %2 : vector<1x128xf32> to vector<128x128xf32>
    %6 = arith.addf %4, %5 : vector<128x128xf32>
    %cst_5 = arith.constant 0.000000e+00 : f32
    %7 = vector.broadcast %cst_5 : f32 to vector<128x128xf32>
    %8 = arith.maximumf %6, %7 : vector<128x128xf32>
    %c0_6 = arith.constant 0 : index
    %c0_7 = arith.constant 0 : index
    %9 = vector.load %arg5[%c0_6, %c0_7] : memref<128x128xbf16, #tpu.memory_space<vmem>>, vector<128x128xbf16>
    %c0_8 = arith.constant 0 : index
    %c0_9 = arith.constant 0 : index
    %10 = vector.load %arg6[%c0_8, %c0_9] : memref<1x128xf32, #tpu.memory_space<vmem>>, vector<1x128xf32>
    %11 = arith.truncf %8 : vector<128x128xf32> to vector<128x128xbf16>
    %cst_10 = arith.constant dense<0.000000e+00> : vector<128x128xf32>
    %12 = tpu.matmul %11, %9, %cst_10 {dimension_numbers = #tpu.dot_dimension_numbers<[1], [0], [0], [1], [0, 0, 1, 1], [], []>} : vector<128x128xbf16>, vector<128x128xbf16>, vector<128x128xf32> -> vector<128x128xf32>
    %13 = vector.broadcast %10 : vector<1x128xf32> to vector<128x128xf32>
    %14 = arith.addf %12, %13 : vector<128x128xf32>
    %cst_11 = arith.constant 0.000000e+00 : f32
    %15 = vector.broadcast %cst_11 : f32 to vector<128x128xf32>
    %16 = arith.maximumf %14, %15 : vector<128x128xf32>
    %c0_12 = arith.constant 0 : index
    %c0_13 = arith.constant 0 : index
    %17 = vector.load %arg7[%c0_12, %c0_13] : memref<128x128xbf16, #tpu.memory_space<vmem>>, vector<128x128xbf16>
    %c0_14 = arith.constant 0 : index
    %c0_15 = arith.constant 0 : index
    %18 = vector.load %arg8[%c0_14, %c0_15] : memref<1x128xf32, #tpu.memory_space<vmem>>, vector<1x128xf32>
    %19 = arith.truncf %16 : vector<128x128xf32> to vector<128x128xbf16>
    %cst_16 = arith.constant dense<0.000000e+00> : vector<128x128xf32>
    %20 = tpu.matmul %19, %17, %cst_16 {dimension_numbers = #tpu.dot_dimension_numbers<[1], [0], [0], [1], [0, 0, 1, 1], [], []>} : vector<128x128xbf16>, vector<128x128xbf16>, vector<128x128xf32> -> vector<128x128xf32>
    %21 = vector.broadcast %18 : vector<1x128xf32> to vector<128x128xf32>
    %22 = arith.addf %20, %21 : vector<128x128xf32>
    %cst_17 = arith.constant 1.000000e-01 : f32
    %23 = vector.broadcast %cst_17 : f32 to vector<128x128xf32>
    %24 = arith.mulf %23, %22 : vector<128x128xf32>
    %c0_18 = arith.constant 0 : index
    %c0_19 = arith.constant 0 : index
    %25 = vector.load %arg1[%c0_18, %c0_19] : memref<128x128xbf16, #tpu.memory_space<vmem>>, vector<128x128xbf16>
    %26 = arith.extf %25 : vector<128x128xbf16> to vector<128x128xf32>
    %cst_20 = arith.constant 0.899999976 : f32
    %27 = vector.broadcast %cst_20 : f32 to vector<128x128xf32>
    %28 = arith.mulf %26, %27 : vector<128x128xf32>
    %29 = arith.truncf %28 : vector<128x128xf32> to vector<128x128xbf16>
    %c0_i32 = arith.constant 0 : i32
    %30 = arith.truncf %22 : vector<128x128xf32> to vector<128x128xbf16>
    %cst_21 = arith.constant dense<0.000000e+00> : vector<128x128xf32>
    %31 = tpu.matmul %29, %30, %cst_21 {dimension_numbers = #tpu.dot_dimension_numbers<[1], [0], [0], [1], [0, 0, 1, 1], [], []>} : vector<128x128xbf16>, vector<128x128xbf16>, vector<128x128xf32> -> vector<128x128xf32>
    %32 = arith.addf %31, %24 : vector<128x128xf32>
    %c1_i32 = arith.constant 1 : i32
    %33 = arith.truncf %32 : vector<128x128xf32> to vector<128x128xbf16>
    %cst_22 = arith.constant dense<0.000000e+00> : vector<128x128xf32>
    %34 = tpu.matmul %29, %33, %cst_22 {dimension_numbers = #tpu.dot_dimension_numbers<[1], [0], [0], [1], [0, 0, 1, 1], [], []>} : vector<128x128xbf16>, vector<128x128xbf16>, vector<128x128xf32> -> vector<128x128xf32>
    %35 = arith.addf %34, %24 : vector<128x128xf32>
    %c2_i32 = arith.constant 2 : i32
    %36 = arith.truncf %35 : vector<128x128xf32> to vector<128x128xbf16>
    %cst_23 = arith.constant dense<0.000000e+00> : vector<128x128xf32>
    %37 = tpu.matmul %29, %36, %cst_23 {dimension_numbers = #tpu.dot_dimension_numbers<[1], [0], [0], [1], [0, 0, 1, 1], [], []>} : vector<128x128xbf16>, vector<128x128xbf16>, vector<128x128xf32> -> vector<128x128xf32>
    %38 = arith.addf %37, %24 : vector<128x128xf32>
    %c0_24 = arith.constant 0 : index
    %c0_25 = arith.constant 0 : index
    %39 = vector.load %arg9[%c0_24, %c0_25] : memref<128x128xf32, #tpu.memory_space<vmem>>, vector<128x128xf32>
    tpu.vector_store %arg9[%c0_24, %c0_25], %38 {strides = array<i32>} : memref<128x128xf32, #tpu.memory_space<vmem>>, vector<128x128xf32>,
    return
  }
  func.func @transform_0(%arg0: i32) -> (i32, i32) {
    %c0_i32 = arith.constant 0 : i32
    %c0_i32_0 = arith.constant 0 : i32
    %c0_i32_1 = arith.constant 0 : i32
    return %c0_i32, %c0_i32_0 : i32, i32
  }
  func.func @transform_1(%arg0: i32) -> (i32, i32) {
    %c0_i32 = arith.constant 0 : i32
    %c0_i32_0 = arith.constant 0 : i32
    %c0_i32_1 = arith.constant 0 : i32
    return %c0_i32, %c0_i32_0 : i32, i32
  }
  func.func @transform_2(%arg0: i32) -> (i32, i32) {
    %c0_i32 = arith.constant 0 : i32
    %c0_i32_0 = arith.constant 0 : i32
    %c0_i32_1 = arith.constant 0 : i32
    return %c0_i32, %c0_i32_0 : i32, i32
  }
  func.func @transform_3(%arg0: i32) -> (i32, i32) {
    %c0_i32 = arith.constant 0 : i32
    %c0_i32_0 = arith.constant 0 : i32
    %c0_i32_1 = arith.constant 0 : i32
    return %c0_i32, %c0_i32_0 : i32, i32
  }
  func.func @transform_4(%arg0: i32) -> (i32, i32) {
    %c0_i32 = arith.constant 0 : i32
    %c0_i32_0 = arith.constant 0 : i32
    %c0_i32_1 = arith.constant 0 : i32
    return %c0_i32, %c0_i32_0 : i32, i32
  }
  func.func @transform_5(%arg0: i32) -> (i32, i32) {
    %c0_i32 = arith.constant 0 : i32
    %c0_i32_0 = arith.constant 0 : i32
    %c0_i32_1 = arith.constant 0 : i32
    return %c0_i32, %c0_i32_0 : i32, i32
  }
  func.func @transform_6(%arg0: i32) -> (i32, i32) {
    %c0_i32 = arith.constant 0 : i32
    %c0_i32_0 = arith.constant 0 : i32
    %c0_i32_1 = arith.constant 0 : i32
    return %c0_i32, %c0_i32_0 : i32, i32
  }
  func.func @transform_7(%arg0: i32) -> (i32, i32) {
    %c0_i32 = arith.constant 0 : i32
    %c0_i32_0 = arith.constant 0 : i32
    %c0_i32_1 = arith.constant 0 : i32
    return %c0_i32, %c0_i32_0 : i32, i32
  }
  func.func @transform_8(%arg0: i32) -> (i32, i32) {
    %c0_i32 = arith.constant 0 : i32
    %c0_i32_0 = arith.constant 0 : i32
    %c0_i32_1 = arith.constant 0 : i32
    return %c0_i32, %c0_i32_0 : i32, i32
  }
}

</mosaic_0001>

<bundles_post_ra>
// kernel: tpu_custom_call.1
= control target key start
LH: loop header
LB: loop body
LE: loop exit
PB: predicated region body
PF: predicated region fallthrough
CT: control target
= control target key end

     0   :  { %13 = vsyncpa [#allocation3], 0  ;;  %s1441_s0 = inlined_call_operand.hbm [shape: bf16[128,128], index: 0, kind: input, shape index: {}]   ;;  %s1442_s1 = inlined_call_operand.hbm [shape: f32[128,128], index: 1, kind: input, shape index: {}]   ;;  %s1443_s2 = inlined_call_operand.hbm [shape: bf16[128,128], index: 2, kind: input, shape index: {}]   ;;  %s1444_s3 = inlined_call_operand.vmem [shape: f32[1,128], index: 3, kind: input, shape index: {}]   ;;  %s1445_s4 = inlined_call_operand.hbm [shape: bf16[128,128], index: 4, kind: input, shape index: {}]   ;;  %s1446_s5 = inlined_call_operand.vmem [shape: f32[1,128], index: 5, kind: input, shape index: {}]   ;;  %s1447_s6 = inlined_call_operand.hbm [shape: bf16[128,128], index: 6, kind: input, shape index: {}]   ;;  %s1448_s7 = inlined_call_operand.vmem [shape: f32[1,128], index: 7, kind: input, shape index: {}]   ;;  %s1449_s8 = inlined_call_operand.hbm [shape: f32[128,128], index: 8, kind: output, shape index: {}]  }
   0x1   :  { %14 = vsyncpa [#allocation6], 0 }
   0x2   :  { %15 = vsyncpa [#allocation9], 0  ;;  %s34_s29 = sshll.u32 %s1442_s1, 4  ;;  %s35_s29 = int_to_ptr.hbm [resolvable:$true] %s34_s29 }
   0x3   :  { %16 = vsyncpa [#allocation4], 0  ;;  %s1151_s30 = smov [#allocation5]   ;;  %s1152_s10 = smov 128  }
   0x4   :  { %s36_s9 = sshll.u32 %s1151_s30, 4  ;;  %s1153_s11 = smov 8   ;;  %s37_s9 = int_to_ptr.vmem [resolvable:$true] %s36_s9 }
   0x5   :  { %42 = dma.hbm_to_vmem [thread:$0]  %s35_s29, 2048, %s37_s9, [#allocation6], %s1152_s10, %s1152_s10, %s1153_s11  }
   0x6   :  { %s62_s14 = sshll.u32 %s1445_s4, 4  ;;  %s1154_s15 = smov [#allocation8]   ;;  %s63_s14 = int_to_ptr.hbm [resolvable:$true] %s62_s14 }
   0x7   :  { %s64_s16 = sshll.u32 %s1154_s15, 4  ;;  %s21_s18 = sshll.u32 %s1441_s0, 4  ;;  %s65_s16 = int_to_ptr.vmem [resolvable:$true] %s64_s16  ;;  %s22_s18 = int_to_ptr.hbm [resolvable:$true] %s21_s18 }
   0x8   :  { %s1155_s19 = smov 64   ;;  %s1156_s20 = smov 4  }
   0x9   :  { %70 = dma.hbm_to_vmem [thread:$0]  %s63_s14, 1024, %s65_s16, [#allocation9], %s1155_s19, %s1155_s19, %s1156_s20  }
   0xa   :  { %s47_s23 = sshll.u32 %s1443_s2, 4  ;;  %s1157_s24 = smov [#allocation2]   ;;  %s48_s23 = int_to_ptr.hbm [resolvable:$true] %s47_s23 }
   0xb   :  { %s23_s25 = sshll.u32 %s1157_s24, 4  ;;  %s1158_s4 = smov [#allocation7]   ;;  %s24_s25 = int_to_ptr.vmem [resolvable:$true] %s23_s25 }
   0xc   :  { %29 = dma.hbm_to_vmem [thread:$0]  %s22_s18, 1024, %s24_s25, [#allocation3], %s1155_s19, %s1155_s19, %s1156_s20  }
   0xd   :  { %s49_s26 = sshll.u32 %s1158_s4, 4  ;;  %s77_s0 = sshll.u32 %s1447_s6, 4  ;;  %s50_s26 = int_to_ptr.vmem [resolvable:$true] %s49_s26  ;;  %s78_s0 = int_to_ptr.hbm [resolvable:$true] %s77_s0 }
   0xe   :  { %55 = dma.hbm_to_vmem [thread:$0]  %s48_s23, 1024, %s50_s26, [#allocation6], %s1155_s19, %s1155_s19, %s1156_s20  }
   0xf   :  { %s1159_s29 = smov [#allocation10]  }
  0x10   :  { %s79_s30 = sshll.u32 %s1159_s29, 4  ;;  %s80_s30 = int_to_ptr.vmem [resolvable:$true] %s79_s30 }
  0x11   :  { %85 = dma.hbm_to_vmem [thread:$0]  %s78_s0, 1024, %s80_s30, [#allocation9], %s1155_s19, %s1155_s19, %s1156_s20  }
  0x12   :  { %1143 = dma.done.wait [#allocation3], 1024  }
  0x13   :  { %1144 = vsyncadd [#allocation3], 4294966272 }
  0x14   :  { %1145 = dma.done.wait [#allocation6], 3072  }
  0x15   :  { %1146 = vsyncadd [#allocation6], 4294964224 }
  0x16   :  { %1147 = dma.done.wait [#allocation9], 2048  }
  0x17   :  { %1148 = vsyncadd [#allocation9], 4294965248  ;;  %v914_v0 = vld [vmem:[#allocation7 + $0x38] sm:$0xff]  ;;  %v913_v1 = vld [vmem:[#allocation7 + $0x30] sm:$0xff]  ;;  %s796_s16 = sshll.u32 %s1449_s8, 4  ;;  %s797_s16 = int_to_ptr.hbm [resolvable:$true] %s796_s16 }
  0x18   :  { %200 = vmatpush.bf16.msra.mxu0 %v914_v0  ;;  %970 = vmatpush.bf16.msra.mxu2 %v914_v0  ;;  %v912_v2 = vld [vmem:[#allocation7 + $0x28] sm:$0xff]  ;;  %v911_v3 = vld [vmem:[#allocation7 + $0x20] sm:$0xff]  ;;  %v910_v4 = vld [vmem:[#allocation7 + $0x18] sm:$0xff] }
  0x19   :  { %v909_v5 = vld [vmem:[#allocation7 + $0x10] sm:$0xff]  ;;  %v908_v6 = vld [vmem:[#allocation7 + $0x8] sm:$0xff]  ;;  %v907_v7 = vld [vmem:[#allocation7] sm:$0xff] }
  0x1a   :  { %v108_v8 = vld [vmem:[#allocation5] sm:$0xff]  ;;  %v109_v9 = vld [vmem:[#allocation5 + $0x8] sm:$0xff]  ;;  %v110_v14 = vld [vmem:[#allocation5 + $0x10] sm:$0xff] }
  0x1b   :  { %v141_v10 = vpack.c.bf16 %v109_v9, %v108_v8  ;;  %v116_v11 = vld [vmem:[#allocation5 + $0x40] sm:$0xff]  ;;  %v117_v12 = vld [vmem:[#allocation5 + $0x48] sm:$0xff]  ;;  %v111_v15 = vld [vmem:[#allocation5 + $0x18] sm:$0xff] }
  0x1c   :  { %201 = vmatpush.bf16.msra.mxu0 %v913_v1  ;;  %971 = vmatpush.bf16.msra.mxu2 %v913_v1  ;;  %v145_v13 = vpack.c.bf16 %v117_v12, %v116_v11  ;;  %v142_v16 = vpack.c.bf16 %v111_v15, %v110_v14  ;;  %v118_v17 = vld [vmem:[#allocation5 + $0x50] sm:$0xff]  ;;  %v119_v18 = vld [vmem:[#allocation5 + $0x58] sm:$0xff]  ;;  %v112_v22 = vld [vmem:[#allocation5 + $0x20] sm:$0xff] }
  0x1d   :  { %v146_v19 = vpack.c.bf16 %v119_v18, %v118_v17  ;;  %v922_v20 = vld [vmem:[#allocation8 + $0x38] sm:$0xff]  ;;  %v921_v21 = vld [vmem:[#allocation8 + $0x30] sm:$0xff]  ;;  %v113_v23 = vld [vmem:[#allocation5 + $0x28] sm:$0xff] }
  0x1e   :  { %341 = vmatpush.bf16.msra.mxu1 %v922_v20  ;;  %978 = vmatpush.bf16.msra.mxu3 %v922_v20  ;;  %v920_v24 = vld [vmem:[#allocation8 + $0x28] sm:$0xff]  ;;  %v143_v25 = vpack.c.bf16 %v113_v23, %v112_v22  ;;  %v120_v26 = vld [vmem:[#allocation5 + $0x60] sm:$0xff]  ;;  %v114_v30 = vld [vmem:[#allocation5 + $0x30] sm:$0xff] }
  0x1f   :  { %v121_v27 = vld [vmem:[#allocation5 + $0x68] sm:$0xff]  ;;  %v919_v28 = vld [vmem:[#allocation8 + $0x20] sm:$0xff]  ;;  %v115_v31 = vld [vmem:[#allocation5 + $0x38] sm:$0xff] }
  0x20   :  { %202 = vmatpush.bf16.msra.mxu0 %v912_v2  ;;  %972 = vmatpush.bf16.msra.mxu2 %v912_v2  ;;  %v147_v29 = vpack.c.bf16 %v121_v27, %v120_v26  ;;  %v144_v32 = vpack.c.bf16 %v115_v31, %v114_v30  ;;  %v122_v33 = vld [vmem:[#allocation5 + $0x70] sm:$0xff]  ;;  %v123_v34 = vld [vmem:[#allocation5 + $0x78] sm:$0xff]  ;;  %v916_v38 = vld [vmem:[#allocation8 + $0x8] sm:$0xff] }
  0x21   :  { %v148_v35 = vpack.c.bf16 %v123_v34, %v122_v33  ;;  %v918_v36 = vld [vmem:[#allocation8 + $0x18] sm:$0xff]  ;;  %v917_v37 = vld [vmem:[#allocation8 + $0x10] sm:$0xff]  ;;  %v915_v39 = vld [vmem:[#allocation8] sm:$0xff] }
  0x22   :  { %342 = vmatpush.bf16.msra.mxu1 %v921_v21  ;;  %979 = vmatpush.bf16.msra.mxu3 %v921_v21  ;;  %v1227_v41 = vld [vmem:[%s1444_s3] ss:$0 sm:$0xff]  ;;  %v930_v9 = vld [vmem:[#allocation10 + $0x38] sm:$0xff] }
  0x23   :  { %v927_v21 = vld [vmem:[#allocation10 + $0x20] sm:$0xff] }
  0x24   :  { %203 = vmatpush.bf16.msra.mxu0 %v911_v3  ;;  %973 = vmatpush.bf16.msra.mxu2 %v911_v3 }
  0x26   :  { %343 = vmatpush.bf16.msra.mxu1 %v920_v24  ;;  %980 = vmatpush.bf16.msra.mxu3 %v920_v24 }
  0x28   :  { %204 = vmatpush.bf16.msra.mxu0 %v910_v4  ;;  %974 = vmatpush.bf16.msra.mxu2 %v910_v4 }
  0x2a   :  { %344 = vmatpush.bf16.msra.mxu1 %v919_v28  ;;  %981 = vmatpush.bf16.msra.mxu3 %v919_v28 }
  0x2c   :  { %205 = vmatpush.bf16.msra.mxu0 %v909_v5  ;;  %975 = vmatpush.bf16.msra.mxu2 %v909_v5 }
  0x2e   :  { %345 = vmatpush.bf16.msra.mxu1 %v918_v36  ;;  %982 = vmatpush.bf16.msra.mxu3 %v918_v36 }
  0x30   :  { %206 = vmatpush.bf16.msra.mxu0 %v908_v6  ;;  %976 = vmatpush.bf16.msra.mxu2 %v908_v6 }
  0x32   :  { %346 = vmatpush.bf16.msra.mxu1 %v917_v37  ;;  %983 = vmatpush.bf16.msra.mxu3 %v917_v37  ;;  %v926_v37 = vld [vmem:[#allocation10 + $0x18] sm:$0xff] }
  0x34   :  { %207 = vmatpush.bf16.msra.mxu0 %v907_v7  ;;  %977 = vmatpush.bf16.msra.mxu2 %v907_v7 }
  0x36   :  { %347 = vmatpush.bf16.msra.mxu1 %v916_v38  ;;  %984 = vmatpush.bf16.msra.mxu3 %v916_v38  ;;  %v925_v38 = vld [vmem:[#allocation10 + $0x10] sm:$0xff] }
  0x37   :  { %208 = vmatmul.bf16.vlgmr.msra.gmra.mxu0 %v141_v10  ;;  %228 = vmatmul.bf16.vlgmr.msra.gmra.mxu2 %v145_v13  ;;  %v929_v13 = vld [vmem:[#allocation10 + $0x30] sm:$0xff] }
  0x38   :  { %482 = vmatpush.bf16.msrb.mxu2 %v930_v9 }
  0x3a   :  { %348 = vmatpush.bf16.msra.mxu1 %v915_v39  ;;  %985 = vmatpush.bf16.msra.mxu3 %v915_v39  ;;  %v924_v39 = vld [vmem:[#allocation10 + $0x8] sm:$0xff] }
  0x3c   :  { %483 = vmatpush.bf16.msrb.mxu2 %v929_v13 }
  0x47   :  { %213 = vmatmul.bf16.gmra.mxu0 %v142_v16  ;;  %233 = vmatmul.bf16.gmra.mxu2 %v146_v19  ;;  %v928_v16 = vld [vmem:[#allocation10 + $0x28] sm:$0xff] }
  0x48   :  { %484 = vmatpush.bf16.msrb.mxu2 %v928_v16 }
  0x4c   :  { %485 = vmatpush.bf16.msrb.mxu2 %v927_v21 }
  0x50   :  { %486 = vmatpush.bf16.msrb.mxu2 %v926_v37 }
  0x54   :  { %487 = vmatpush.bf16.msrb.mxu2 %v925_v38 }
  0x57   :  { %218 = vmatmul.bf16.gmra.mxu0 %v143_v25  ;;  %238 = vmatmul.bf16.gmra.mxu2 %v147_v29 }
  0x58   :  { %488 = vmatpush.bf16.msrb.mxu2 %v924_v39 }
  0x67   :  { %223 = vmatmul.bf16.gmra.mxu0 %v144_v32  ;;  %243 = vmatmul.bf16.gmra.mxu2 %v148_v35 }
  0xb4   :  { %v209_v40 = vpop.f32.mrf.mxu0 }
  0xb5   :  { %v210_v42 = vadd.f32 %v1227_v41, %v209_v40  ;;  %v923_v40 = vld [vmem:[#allocation10] sm:$0xff] }
  0xb6   :  { %489 = vmatpush.bf16.msrb.mxu2 %v923_v40 }
  0xb7   :  { %v249_v46 = vmax.f32 %v210_v42, 0.0 }
  0xba   :  { %v229_v45 = vpop.f32.mrf.mxu2 }
  0xbb   :  { %v230_v49 = vadd.f32 %v1227_v41, %v229_v45 }
  0xbc   :  { %v211_v43 = vpop.f32.mrf.mxu0 }
  0xbd   :  { %v212_v44 = vadd.f32 %v1227_v41, %v211_v43  ;;  %v257_v52 = vmax.f32 %v230_v49, 0.0  ;;  %v997_v43 = vld [vmem:[%s1446_s5] ss:$0 sm:$0xff] }
  0xbf   :  { %v250_v47 = vmax.f32 %v212_v44, 0.0 }
  0xc1   :  { %v282_v48 = vpack.c.bf16 %v250_v47, %v249_v46 }
  0xc2   :  { %v231_v51 = vpop.f32.mrf.mxu2 }
  0xc3   :  { %349 = vmatmul.bf16.vlgmr.msra.gmra.mxu1 %v282_v48  ;;  %v232_v53 = vadd.f32 %v1227_v41, %v231_v51 }
  0xc4   :  { %v214_v50 = vpop.f32.mrf.mxu0 }
  0xc5   :  { %v258_v54 = vmax.f32 %v232_v53, 0.0  ;;  %v215_v55 = vadd.f32 %v1227_v41, %v214_v50 }
  0xc7   :  { %v286_v56 = vpack.c.bf16 %v258_v54, %v257_v52  ;;  %v251_v60 = vmax.f32 %v215_v55, 0.0 }
  0xc9   :  { %369 = vmatmul.bf16.vlgmr.msra.gmra.mxu3 %v286_v56 }
  0xca   :  { %v234_v59 = vpop.f32.mrf.mxu2 }
  0xcb   :  { %v235_v63 = vadd.f32 %v1227_v41, %v234_v59 }
  0xcc   :  { %v216_v57 = vpop.f32.mrf.mxu0 }
  0xcd   :  { %v217_v58 = vadd.f32 %v1227_v41, %v216_v57  ;;  %v259_v2 = vmax.f32 %v235_v63, 0.0 }
  0xcf   :  { %v252_v61 = vmax.f32 %v217_v58, 0.0 }
  0xd1   :  { %v283_v62 = vpack.c.bf16 %v252_v61, %v251_v60 }
  0xd2   :  { %v236_v1 = vpop.f32.mrf.mxu2 }
  0xd3   :  { %354 = vmatmul.bf16.gmra.mxu1 %v283_v62  ;;  %v237_v3 = vadd.f32 %v1227_v41, %v236_v1 }
  0xd4   :  { %v219_v0 = vpop.f32.mrf.mxu0 }
  0xd5   :  { %v260_v4 = vmax.f32 %v237_v3, 0.0  ;;  %v220_v5 = vadd.f32 %v1227_v41, %v219_v0 }
  0xd7   :  { %v287_v6 = vpack.c.bf16 %v260_v4, %v259_v2  ;;  %v253_v11 = vmax.f32 %v220_v5, 0.0 }
  0xd9   :  { %374 = vmatmul.bf16.gmra.mxu3 %v287_v6 }
  0xda   :  { %v239_v10 = vpop.f32.mrf.mxu2 }
  0xdb   :  { %v240_v15 = vadd.f32 %v1227_v41, %v239_v10 }
  0xdc   :  { %v221_v7 = vpop.f32.mrf.mxu0 }
  0xdd   :  { %v222_v8 = vadd.f32 %v1227_v41, %v221_v7  ;;  %v261_v19 = vmax.f32 %v240_v15, 0.0 }
  0xdf   :  { %v254_v12 = vmax.f32 %v222_v8, 0.0 }
  0xe1   :  { %v284_v14 = vpack.c.bf16 %v254_v12, %v253_v11 }
  0xe2   :  { %v241_v18 = vpop.f32.mrf.mxu2 }
  0xe3   :  { %359 = vmatmul.bf16.gmra.mxu1 %v284_v14  ;;  %v242_v20 = vadd.f32 %v1227_v41, %v241_v18 }
  0xe4   :  { %v224_v17 = vpop.f32.mrf.mxu0 }
  0xe5   :  { %v262_v22 = vmax.f32 %v242_v20, 0.0  ;;  %v225_v23 = vadd.f32 %v1227_v41, %v224_v17 }
  0xe7   :  { %v288_v24 = vpack.c.bf16 %v262_v22, %v261_v19  ;;  %v255_v28 = vmax.f32 %v225_v23, 0.0 }
  0xe9   :  { %379 = vmatmul.bf16.gmra.mxu3 %v288_v24 }
  0xea   :  { %v244_v27 = vpop.f32.mrf.mxu2 }
  0xeb   :  { %v245_v31 = vadd.f32 %v1227_v41, %v244_v27 }
  0xec   :  { %v226_v25 = vpop.f32.mrf.mxu0 }
  0xed   :  { %v227_v26 = vadd.f32 %v1227_v41, %v226_v25  ;;  %v263_v33 = vmax.f32 %v245_v31, 0.0 }
  0xef   :  { %v256_v29 = vmax.f32 %v227_v26, 0.0 }
  0xf1   :  { %v285_v30 = vpack.c.bf16 %v256_v29, %v255_v28 }
  0xf2   :  { %v246_v32 = vpop.f32.mrf.mxu2 }
  0xf3   :  { %364 = vmatmul.bf16.gmra.mxu1 %v285_v30  ;;  %v247_v34 = vadd.f32 %v1227_v41, %v246_v32 }
  0xf5   :  { %v264_v35 = vmax.f32 %v247_v34, 0.0 }
  0xf7   :  { %v289_v36 = vpack.c.bf16 %v264_v35, %v263_v33  ;;  %v998_v35 = vld [vmem:[%s1448_s7] ss:$0 sm:$0xff]  ;;  %s1160_s7 = smov [#allocation11]  }
  0xf8   :  { %s794_s13 = sshll.u32 %s1160_s7, 4  ;;  %s795_s13 = int_to_ptr.vmem [resolvable:$true] %s794_s13 }
  0xf9   :  { %384 = vmatmul.bf16.gmra.mxu3 %v289_v36 }
 0x140   :  { %v350_v42 = vpop.f32.mrf.mxu1 }
 0x141   :  { %v351_v44 = vadd.f32 %v997_v43, %v350_v42 }
 0x143   :  { %v390_v41 = vmax.f32 %v351_v44, 0.0 }
 0x148   :  { %v352_v45 = vpop.f32.mrf.mxu1 }
 0x149   :  { %v353_v46 = vadd.f32 %v997_v43, %v352_v45 }
 0x14b   :  { %v391_v47 = vmax.f32 %v353_v46, 0.0 }
 0x14c   :  { %v370_v62 = vpop.f32.mrf.mxu3 }
 0x14d   :  { %v423_v48 = vpack.c.bf16 %v391_v47, %v390_v41  ;;  %v371_v9 = vadd.f32 %v997_v43, %v370_v62 }
 0x14f   :  { %490 = vmatmul.bf16.vlgmr.msrb.gmra.mxu2 %v423_v48  ;;  %v398_v11 = vmax.f32 %v371_v9, 0.0 }
 0x150   :  { %v355_v49 = vpop.f32.mrf.mxu1 }
 0x151   :  { %v356_v50 = vadd.f32 %v997_v43, %v355_v49 }
 0x153   :  { %v392_v53 = vmax.f32 %v356_v50, 0.0 }
 0x154   :  { %v372_v1 = vpop.f32.mrf.mxu3 }
 0x155   :  { %v373_v10 = vadd.f32 %v997_v43, %v372_v1 }
 0x157   :  { %v399_v12 = vmax.f32 %v373_v10, 0.0 }
 0x158   :  { %v357_v51 = vpop.f32.mrf.mxu1 }
 0x159   :  { %v358_v52 = vadd.f32 %v997_v43, %v357_v51  ;;  %v427_v14 = vpack.c.bf16 %v399_v12, %v398_v11  ;;  %v932_v11 = vld [vmem:[#allocation2] sm:$0xff]  }
 0x15a   :  { %v933_v12 = vunpack.c.l.bf16 %v932_v11 }
 0x15b   :  { %v393_v54 = vmax.f32 %v358_v52, 0.0 }
 0x15c   :  { %v375_v8 = vpop.f32.mrf.mxu3 }
 0x15d   :  { %v424_v55 = vpack.c.bf16 %v393_v54, %v392_v53  ;;  %v376_v16 = vadd.f32 %v997_v43, %v375_v8 }
 0x15f   :  { %495 = vmatmul.bf16.gmra.mxu2 %v424_v55  ;;  %v400_v18 = vmax.f32 %v376_v16, 0.0 }
 0x160   :  { %v360_v56 = vpop.f32.mrf.mxu1 }
 0x161   :  { %v361_v57 = vadd.f32 %v997_v43, %v360_v56 }
 0x163   :  { %v394_v60 = vmax.f32 %v361_v57, 0.0 }
 0x164   :  { %v377_v13 = vpop.f32.mrf.mxu3 }
 0x165   :  { %v378_v17 = vadd.f32 %v997_v43, %v377_v13  ;;  %v934_v13 = vunpack.c.h.bf16 %v932_v11 }
 0x167   :  { %v401_v19 = vmax.f32 %v378_v17, 0.0  ;;  %v963_v17 = vld [vmem:[#allocation2 + $0x8] sm:$0xff]  }
 0x168   :  { %v362_v58 = vpop.f32.mrf.mxu1 }
 0x169   :  { %v363_v59 = vadd.f32 %v997_v43, %v362_v58  ;;  %v428_v20 = vpack.c.bf16 %v401_v19, %v400_v18  ;;  %v937_v18 = vunpack.c.l.bf16 %v963_v17  ;;  %v938_v19 = vunpack.c.h.bf16 %v963_v17 }
 0x16b   :  { %v395_v61 = vmax.f32 %v363_v59, 0.0 }
 0x16c   :  { %v380_v15 = vpop.f32.mrf.mxu3 }
 0x16d   :  { %v425_v63 = vpack.c.bf16 %v395_v61, %v394_v60  ;;  %v381_v22 = vadd.f32 %v997_v43, %v380_v15  ;;  %v580_v15 = vmul.f32 0.9, %v934_v13 }
 0x16f   :  { %500 = vmatmul.bf16.gmra.mxu2 %v425_v63  ;;  %v402_v25 = vmax.f32 %v381_v22, 0.0 }
 0x170   :  { %v365_v0 = vpop.f32.mrf.mxu1 }
 0x171   :  { %v366_v2 = vadd.f32 %v997_v43, %v365_v0 }
 0x173   :  { %v396_v5 = vmax.f32 %v366_v2, 0.0 }
 0x174   :  { %v382_v21 = vpop.f32.mrf.mxu3 }
 0x175   :  { %v383_v23 = vadd.f32 %v997_v43, %v382_v21  ;;  %v582_v21 = vmul.f32 0.9, %v938_v19 }
 0x177   :  { %v403_v26 = vmax.f32 %v383_v23, 0.0  ;;  %v964_v23 = vld [vmem:[#allocation2 + $0x10] sm:$0xff]  }
 0x178   :  { %v367_v3 = vpop.f32.mrf.mxu1 }
 0x179   :  { %v368_v4 = vadd.f32 %v997_v43, %v367_v3  ;;  %v429_v27 = vpack.c.bf16 %v403_v26, %v402_v25  ;;  %v942_v25 = vunpack.c.h.bf16 %v964_v23 }
 0x17b   :  { %v397_v6 = vmax.f32 %v368_v4, 0.0 }
 0x17c   :  { %v385_v24 = vpop.f32.mrf.mxu3 }
 0x17d   :  { %v426_v7 = vpack.c.bf16 %v397_v6, %v396_v5  ;;  %v386_v29 = vadd.f32 %v997_v43, %v385_v24  ;;  %v941_v24 = vunpack.c.l.bf16 %v964_v23 }
 0x17f   :  { %505 = vmatmul.bf16.gmra.mxu2 %v426_v7  ;;  %v404_v31 = vmax.f32 %v386_v29, 0.0  ;;  %v583_v26 = vmul.f32 0.9, %v941_v24  ;;  %v965_v29 = vld [vmem:[#allocation2 + $0x18] sm:$0xff]  }
 0x184   :  { %v387_v28 = vpop.f32.mrf.mxu3 }
 0x185   :  { %v388_v30 = vadd.f32 %v997_v43, %v387_v28 }
 0x187   :  { %v405_v32 = vmax.f32 %v388_v30, 0.0  ;;  %v945_v30 = vunpack.c.l.bf16 %v965_v29 }
 0x189   :  { %v430_v33 = vpack.c.bf16 %v405_v32, %v404_v31  ;;  %v946_v31 = vunpack.c.h.bf16 %v965_v29  ;;  %v585_v32 = vmul.f32 0.9, %v945_v30 }
 0x18f   :  { %510 = vmatmul.bf16.gmra.mxu2 %v427_v14  ;;  %v579_v14 = vmul.f32 0.9, %v933_v12 }
 0x191   :  { %v1299_v16 = vpack.c.bf16 %v580_v15, %v579_v14 }
 0x19f   :  { %515 = vmatmul.bf16.gmra.mxu2 %v428_v20  ;;  %v581_v20 = vmul.f32 0.9, %v937_v18 }
 0x1a1   :  { %v1302_v22 = vpack.c.bf16 %v582_v21, %v581_v20 }
 0x1af   :  { %520 = vmatmul.bf16.gmra.mxu2 %v429_v27  ;;  %v584_v27 = vmul.f32 0.9, %v942_v25 }
 0x1b1   :  { %v1305_v28 = vpack.c.bf16 %v584_v27, %v583_v26 }
 0x1bf   :  { %525 = vmatmul.bf16.gmra.mxu2 %v430_v33  ;;  %v586_v33 = vmul.f32 0.9, %v946_v31 }
 0x1d2   :  { %v491_v34 = vpop.f32.mrf.mxu2 }
 0x1d3   :  { %v1251_v37 = vadd.f32 %v998_v35, %v491_v34  ;;  %v1308_v34 = vpack.c.bf16 %v586_v33, %v585_v32 }
 0x1d5   :  { %v1324_v12 = vmul.f32 0.1, %v1251_v37 }
 0x1da   :  { %v493_v36 = vpop.f32.mrf.mxu2 }
 0x1db   :  { %v1253_v38 = vadd.f32 %v998_v35, %v493_v36 }
 0x1dd   :  { %v603_v39 = vpack.c.bf16 %v1253_v38, %v1251_v37  ;;  %v1327_v13 = vmul.f32 0.1, %v1253_v38 }
 0x1e2   :  { %v496_v40 = vpop.f32.mrf.mxu2 }
 0x1e3   :  { %v1257_v43 = vadd.f32 %v998_v35, %v496_v40 }
 0x1e5   :  { %v1332_v20 = vmul.f32 0.1, %v1257_v43 }
 0x1ea   :  { %v498_v42 = vpop.f32.mrf.mxu2 }
 0x1eb   :  { %v1259_v44 = vadd.f32 %v998_v35, %v498_v42 }
 0x1ed   :  { %v604_v45 = vpack.c.bf16 %v1259_v44, %v1257_v43  ;;  %v1335_v21 = vmul.f32 0.1, %v1259_v44 }
 0x1f2   :  { %v501_v46 = vpop.f32.mrf.mxu2 }
 0x1f3   :  { %v1263_v47 = vadd.f32 %v998_v35, %v501_v46  ;;  %v967_v46 = vld [vmem:[#allocation2 + $0x28] sm:$0xff]  }
 0x1f5   :  { %v1340_v26 = vmul.f32 0.1, %v1263_v47 }
 0x1fa   :  { %v503_v41 = vpop.f32.mrf.mxu2 }
 0x1fb   :  { %v1265_v48 = vadd.f32 %v998_v35, %v503_v41  ;;  %v953_v41 = vunpack.c.l.bf16 %v967_v46 }
 0x1fd   :  { %v605_v49 = vpack.c.bf16 %v1265_v48, %v1263_v47  ;;  %v1343_v27 = vmul.f32 0.1, %v1265_v48 }
 0x202   :  { %v506_v50 = vpop.f32.mrf.mxu2 }
 0x203   :  { %v1269_v52 = vadd.f32 %v998_v35, %v506_v50  ;;  %v589_v50 = vmul.f32 0.9, %v953_v41 }
 0x205   :  { %v1348_v32 = vmul.f32 0.1, %v1269_v52 }
 0x20a   :  { %v508_v51 = vpop.f32.mrf.mxu2 }
 0x20b   :  { %v1271_v53 = vadd.f32 %v998_v35, %v508_v51 }
 0x20d   :  { %v606_v54 = vpack.c.bf16 %v1271_v53, %v1269_v52  ;;  %v1351_v33 = vmul.f32 0.1, %v1271_v53 }
 0x212   :  { %v511_v55 = vpop.f32.mrf.mxu2 }
 0x213   :  { %v1295_v9 = vadd.f32 %v998_v35, %v511_v55  ;;  %v968_v55 = vld [vmem:[#allocation2 + $0x30] sm:$0xff]  }
 0x21a   :  { %v513_v56 = vpop.f32.mrf.mxu2 }
 0x21b   :  { %v1291_v7 = vadd.f32 %v998_v35, %v513_v56  ;;  %v957_v56 = vunpack.c.l.bf16 %v968_v55 }
 0x21d   :  { %v607_v10 = vpack.c.bf16 %v1291_v7, %v1295_v9 }
 0x222   :  { %v516_v57 = vpop.f32.mrf.mxu2 }
 0x223   :  { %v1289_v6 = vadd.f32 %v998_v35, %v516_v57  ;;  %v958_v57 = vunpack.c.h.bf16 %v968_v55 }
 0x22a   :  { %v518_v58 = vpop.f32.mrf.mxu2 }
 0x22b   :  { %v1285_v4 = vadd.f32 %v998_v35, %v518_v58  ;;  %v591_v58 = vmul.f32 0.9, %v957_v56 }
 0x22d   :  { %v608_v8 = vpack.c.bf16 %v1285_v4, %v1289_v6 }
 0x232   :  { %v521_v59 = vpop.f32.mrf.mxu2 }
 0x233   :  { %v1283_v3 = vadd.f32 %v998_v35, %v521_v59  ;;  %v592_v59 = vmul.f32 0.9, %v958_v57 }
 0x23a   :  { %v523_v60 = vpop.f32.mrf.mxu2 }
 0x23b   :  { %v1279_v1 = vadd.f32 %v998_v35, %v523_v60  ;;  %v1317_v60 = vpack.c.bf16 %v592_v59, %v591_v58  ;;  %v1367_v58 = vmul.f32 0.1, %v1283_v3 }
 0x23d   :  { %v609_v5 = vpack.c.bf16 %v1279_v1, %v1283_v3  ;;  %v1362_v55 = vmul.f32 0.1, %v1279_v1 }
 0x242   :  { %v526_v61 = vpop.f32.mrf.mxu2 }
 0x243   :  { %v1275_v63 = vadd.f32 %v998_v35, %v526_v61  ;;  %v969_v61 = vld [vmem:[#allocation2 + $0x38] sm:$0xff]  }
 0x24a   :  { %v528_v62 = vpop.f32.mrf.mxu2 }
 0x24b   :  { %v1277_v0 = vadd.f32 %v998_v35, %v528_v62  ;;  %v966_v35 = vld [vmem:[#allocation2 + $0x20] sm:$0xff]   ;;  %v961_v62 = vunpack.c.l.bf16 %v969_v61 }
 0x24c   :  { %v949_v36 = vunpack.c.l.bf16 %v966_v35 }
 0x24d   :  { %v610_v2 = vpack.c.bf16 %v1277_v0, %v1275_v63  ;;  %v1359_v52 = vmul.f32 0.1, %v1277_v0 }
 0x24e   :  { %v587_v40 = vmul.f32 0.9, %v949_v36 }
 0x24f   :  { %611 = vmatpush.bf16.msrb.mxu3 %v610_v2  ;;  %v962_v2 = vunpack.c.h.bf16 %v969_v61 }
 0x253   :  { %612 = vmatpush.bf16.msrb.mxu3 %v609_v5  ;;  %v593_v5 = vmul.f32 0.9, %v961_v62  ;;  %v1375_v62 = vmul.f32 0.1, %v1289_v6 }
 0x257   :  { %613 = vmatpush.bf16.msrb.mxu3 %v608_v8  ;;  %v594_v8 = vmul.f32 0.9, %v962_v2 }
 0x25b   :  { %614 = vmatpush.bf16.msrb.mxu3 %v607_v10  ;;  %v1320_v10 = vpack.c.bf16 %v594_v8, %v593_v5  ;;  %v1379_v5 = vmul.f32 0.1, %v1291_v7  ;;  %v1383_v8 = vmul.f32 0.1, %v1295_v9 }
 0x25f   :  { %615 = vmatpush.bf16.msrb.mxu3 %v606_v54 }
 0x263   :  { %616 = vmatpush.bf16.msrb.mxu3 %v605_v49  ;;  %v954_v49 = vunpack.c.h.bf16 %v967_v46 }
 0x265   :  { %v590_v51 = vmul.f32 0.9, %v954_v49 }
 0x267   :  { %617 = vmatpush.bf16.msrb.mxu3 %v604_v45  ;;  %v1314_v54 = vpack.c.bf16 %v590_v51, %v589_v50  ;;  %v1356_v51 = vmul.f32 0.1, %v1275_v63  ;;  %v1371_v63 = vmul.f32 0.1, %v1285_v4 }
 0x26b   :  { %618 = vmatpush.bf16.msrb.mxu3 %v603_v39  ;;  %v950_v39 = vunpack.c.h.bf16 %v966_v35 }
 0x26d   :  { %v588_v42 = vmul.f32 0.9, %v950_v39 }
 0x26e   :  { %619 = vmatmul.bf16.vlgmr.msrb.gmra.mxu3 %v1299_v16 }
 0x26f   :  { %v1311_v45 = vpack.c.bf16 %v588_v42, %v587_v40 }
 0x27e   :  { %624 = vmatmul.bf16.gmra.mxu3 %v1302_v22 }
 0x28e   :  { %629 = vmatmul.bf16.gmra.mxu3 %v1305_v28 }
 0x29e   :  { %634 = vmatmul.bf16.gmra.mxu3 %v1308_v34 }
 0x2ae   :  { %639 = vmatmul.bf16.gmra.mxu3 %v1311_v45 }
 0x2be   :  { %644 = vmatmul.bf16.gmra.mxu3 %v1314_v54 }
 0x2ce   :  { %649 = vmatmul.bf16.gmra.mxu3 %v1317_v60 }
 0x2de   :  { %654 = vmatmul.bf16.gmra.mxu3 %v1320_v10 }
 0x2f1   :  { %v620_v11 = vpop.f32.mrf.mxu3 }
 0x2f2   :  { %v621_v15 = vadd.f32 %v620_v11, %v1324_v12 }
 0x2f9   :  { %v622_v14 = vpop.f32.mrf.mxu3 }
 0x2fa   :  { %v623_v17 = vadd.f32 %v622_v14, %v1327_v13 }
 0x2fc   :  { %v660_v18 = vpack.c.bf16 %v623_v17, %v621_v15 }
 0x301   :  { %v625_v19 = vpop.f32.mrf.mxu3 }
 0x302   :  { %v626_v37 = vadd.f32 %v625_v19, %v1332_v20 }
 0x309   :  { %v627_v23 = vpop.f32.mrf.mxu3 }
 0x30a   :  { %v628_v24 = vadd.f32 %v627_v23, %v1335_v21 }
 0x30c   :  { %v661_v38 = vpack.c.bf16 %v628_v24, %v626_v37 }
 0x311   :  { %v630_v25 = vpop.f32.mrf.mxu3 }
 0x312   :  { %v631_v43 = vadd.f32 %v630_v25, %v1340_v26 }
 0x319   :  { %v632_v29 = vpop.f32.mrf.mxu3 }
 0x31a   :  { %v633_v30 = vadd.f32 %v632_v29, %v1343_v27 }
 0x31c   :  { %v662_v44 = vpack.c.bf16 %v633_v30, %v631_v43 }
 0x321   :  { %v635_v31 = vpop.f32.mrf.mxu3 }
 0x322   :  { %v636_v47 = vadd.f32 %v635_v31, %v1348_v32 }
 0x329   :  { %v637_v35 = vpop.f32.mrf.mxu3 }
 0x32a   :  { %v638_v36 = vadd.f32 %v637_v35, %v1351_v33 }
 0x32c   :  { %v663_v48 = vpack.c.bf16 %v638_v36, %v636_v47 }
 0x331   :  { %v640_v39 = vpop.f32.mrf.mxu3 }
 0x332   :  { %v641_v14 = vadd.f32 %v640_v39, %v1383_v8 }
 0x339   :  { %v642_v40 = vpop.f32.mrf.mxu3 }
 0x33a   :  { %v643_v4 = vadd.f32 %v642_v40, %v1379_v5 }
 0x33c   :  { %v664_v6 = vpack.c.bf16 %v643_v4, %v641_v14 }
 0x341   :  { %v645_v42 = vpop.f32.mrf.mxu3 }
 0x342   :  { %v646_v3 = vadd.f32 %v645_v42, %v1375_v62 }
 0x349   :  { %v647_v46 = vpop.f32.mrf.mxu3 }
 0x34a   :  { %v648_v1 = vadd.f32 %v647_v46, %v1371_v63 }
 0x34c   :  { %v665_v11 = vpack.c.bf16 %v648_v1, %v646_v3 }
 0x351   :  { %v650_v41 = vpop.f32.mrf.mxu3 }
 0x352   :  { %v651_v0 = vadd.f32 %v650_v41, %v1367_v58 }
 0x359   :  { %v652_v49 = vpop.f32.mrf.mxu3 }
 0x35a   :  { %v653_v59 = vadd.f32 %v652_v49, %v1362_v55 }
 0x35c   :  { %v666_v2 = vpack.c.bf16 %v653_v59, %v651_v0 }
 0x361   :  { %v655_v50 = vpop.f32.mrf.mxu3 }
 0x362   :  { %v656_v56 = vadd.f32 %v655_v50, %v1356_v51 }
 0x369   :  { %v657_v53 = vpop.f32.mrf.mxu3 }
 0x36a   :  { %v658_v57 = vadd.f32 %v657_v53, %v1359_v52 }
 0x36c   :  { %v667_v61 = vpack.c.bf16 %v658_v57, %v656_v56 }
 0x36e   :  { %668 = vmatpush.bf16.msrb.mxu0 %v667_v61 }
 0x372   :  { %669 = vmatpush.bf16.msrb.mxu0 %v666_v2 }
 0x376   :  { %670 = vmatpush.bf16.msrb.mxu0 %v665_v11 }
 0x37a   :  { %671 = vmatpush.bf16.msrb.mxu0 %v664_v6 }
 0x37e   :  { %672 = vmatpush.bf16.msrb.mxu0 %v663_v48 }
 0x382   :  { %673 = vmatpush.bf16.msrb.mxu0 %v662_v44 }
 0x386   :  { %674 = vmatpush.bf16.msrb.mxu0 %v661_v38 }
 0x38a   :  { %675 = vmatpush.bf16.msrb.mxu0 %v660_v18 }
 0x38d   :  { %676 = vmatmul.bf16.vlgmr.msrb.gmra.mxu0 %v1299_v16 }
 0x39d   :  { %681 = vmatmul.bf16.gmra.mxu0 %v1302_v22 }
 0x3ad   :  { %686 = vmatmul.bf16.gmra.mxu0 %v1305_v28 }
 0x3bd   :  { %691 = vmatmul.bf16.gmra.mxu0 %v1308_v34 }
 0x3cd   :  { %696 = vmatmul.bf16.gmra.mxu0 %v1311_v45 }
 0x3dd   :  { %701 = vmatmul.bf16.gmra.mxu0 %v1314_v54 }
 0x3ed   :  { %706 = vmatmul.bf16.gmra.mxu0 %v1317_v60 }
 0x3fd   :  { %711 = vmatmul.bf16.gmra.mxu0 %v1320_v10 }
 0x40a   :  { %v677_v7 = vpop.f32.mrf.mxu0 }
 0x40b   :  { %v678_v15 = vadd.f32 %v677_v7, %v1324_v12 }
 0x412   :  { %v679_v9 = vpop.f32.mrf.mxu0 }
 0x413   :  { %v680_v17 = vadd.f32 %v679_v9, %v1327_v13 }
 0x415   :  { %v717_v18 = vpack.c.bf16 %v680_v17, %v678_v15 }
 0x41a   :  { %v682_v19 = vpop.f32.mrf.mxu0 }
 0x41b   :  { %v683_v37 = vadd.f32 %v682_v19, %v1332_v20 }
 0x422   :  { %v684_v23 = vpop.f32.mrf.mxu0 }
 0x423   :  { %v685_v24 = vadd.f32 %v684_v23, %v1335_v21 }
 0x425   :  { %v718_v38 = vpack.c.bf16 %v685_v24, %v683_v37 }
 0x42a   :  { %v687_v25 = vpop.f32.mrf.mxu0 }
 0x42b   :  { %v688_v43 = vadd.f32 %v687_v25, %v1340_v26 }
 0x432   :  { %v689_v29 = vpop.f32.mrf.mxu0 }
 0x433   :  { %v690_v30 = vadd.f32 %v689_v29, %v1343_v27 }
 0x435   :  { %v719_v44 = vpack.c.bf16 %v690_v30, %v688_v43 }
 0x43a   :  { %v692_v31 = vpop.f32.mrf.mxu0 }
 0x43b   :  { %v693_v47 = vadd.f32 %v692_v31, %v1348_v32 }
 0x442   :  { %v694_v35 = vpop.f32.mrf.mxu0 }
 0x443   :  { %v695_v36 = vadd.f32 %v694_v35, %v1351_v33 }
 0x445   :  { %v720_v48 = vpack.c.bf16 %v695_v36, %v693_v47 }
 0x44a   :  { %v697_v39 = vpop.f32.mrf.mxu0 }
 0x44b   :  { %v698_v14 = vadd.f32 %v697_v39, %v1383_v8 }
 0x452   :  { %v699_v40 = vpop.f32.mrf.mxu0 }
 0x453   :  { %v700_v4 = vadd.f32 %v699_v40, %v1379_v5 }
 0x455   :  { %v721_v6 = vpack.c.bf16 %v700_v4, %v698_v14 }
 0x45a   :  { %v702_v42 = vpop.f32.mrf.mxu0 }
 0x45b   :  { %v703_v3 = vadd.f32 %v702_v42, %v1375_v62 }
 0x462   :  { %v704_v46 = vpop.f32.mrf.mxu0 }
 0x463   :  { %v705_v1 = vadd.f32 %v704_v46, %v1371_v63 }
 0x465   :  { %v722_v11 = vpack.c.bf16 %v705_v1, %v703_v3 }
 0x46a   :  { %v707_v41 = vpop.f32.mrf.mxu0 }
 0x46b   :  { %v708_v0 = vadd.f32 %v707_v41, %v1367_v58 }
 0x472   :  { %v709_v49 = vpop.f32.mrf.mxu0 }
 0x473   :  { %v710_v59 = vadd.f32 %v709_v49, %v1362_v55 }
 0x475   :  { %v723_v2 = vpack.c.bf16 %v710_v59, %v708_v0 }
 0x47a   :  { %v712_v50 = vpop.f32.mrf.mxu0 }
 0x47b   :  { %v713_v56 = vadd.f32 %v712_v50, %v1356_v51 }
 0x482   :  { %v714_v53 = vpop.f32.mrf.mxu0 }
 0x483   :  { %v715_v57 = vadd.f32 %v714_v53, %v1359_v52 }
 0x485   :  { %v724_v61 = vpack.c.bf16 %v715_v57, %v713_v56 }
 0x487   :  { %725 = vmatpush.bf16.msrb.mxu1 %v724_v61 }
 0x48b   :  { %726 = vmatpush.bf16.msrb.mxu1 %v723_v2 }
 0x48f   :  { %727 = vmatpush.bf16.msrb.mxu1 %v722_v11 }
 0x493   :  { %728 = vmatpush.bf16.msrb.mxu1 %v721_v6 }
 0x497   :  { %729 = vmatpush.bf16.msrb.mxu1 %v720_v48 }
 0x49b   :  { %730 = vmatpush.bf16.msrb.mxu1 %v719_v44 }
 0x49f   :  { %731 = vmatpush.bf16.msrb.mxu1 %v718_v38 }
 0x4a3   :  { %732 = vmatpush.bf16.msrb.mxu1 %v717_v18 }
 0x4a6   :  { %733 = vmatmul.bf16.vlgmr.msrb.gmra.mxu1 %v1299_v16 }
 0x4b6   :  { %738 = vmatmul.bf16.gmra.mxu1 %v1302_v22 }
 0x4c6   :  { %743 = vmatmul.bf16.gmra.mxu1 %v1305_v28 }
 0x4d6   :  { %748 = vmatmul.bf16.gmra.mxu1 %v1308_v34 }
 0x4e6   :  { %753 = vmatmul.bf16.gmra.mxu1 %v1311_v45 }
 0x4f6   :  { %758 = vmatmul.bf16.gmra.mxu1 %v1314_v54 }
 0x506   :  { %763 = vmatmul.bf16.gmra.mxu1 %v1317_v60 }
 0x516   :  { %768 = vmatmul.bf16.gmra.mxu1 %v1320_v10 }
 0x523   :  { %v734_v7 = vpop.f32.mrf.mxu1 }
 0x524   :  { %v735_v9 = vadd.f32 %v734_v7, %v1324_v12 }
 0x526   :  { %774 = vst [vmem:[#allocation11] sm:$0xff] %v735_v9 }
 0x52b   :  { %v736_v15 = vpop.f32.mrf.mxu1 }
 0x52c   :  { %v737_v16 = vadd.f32 %v736_v15, %v1327_v13 }
 0x52e   :  { %775 = vst [vmem:[#allocation11 + $0x8] sm:$0xff] %v737_v16 }
 0x533   :  { %v739_v22 = vpop.f32.mrf.mxu1 }
 0x534   :  { %v740_v28 = vadd.f32 %v739_v22, %v1332_v20 }
 0x536   :  { %776 = vst [vmem:[#allocation11 + $0x10] sm:$0xff] %v740_v28 }
 0x53b   :  { %v741_v34 = vpop.f32.mrf.mxu1 }
 0x53c   :  { %v742_v45 = vadd.f32 %v741_v34, %v1335_v21 }
 0x53e   :  { %777 = vst [vmem:[#allocation11 + $0x18] sm:$0xff] %v742_v45 }
 0x543   :  { %v744_v54 = vpop.f32.mrf.mxu1 }
 0x544   :  { %v745_v60 = vadd.f32 %v744_v54, %v1340_v26 }
 0x546   :  { %778 = vst [vmem:[#allocation11 + $0x20] sm:$0xff] %v745_v60 }
 0x54b   :  { %v746_v10 = vpop.f32.mrf.mxu1 }
 0x54c   :  { %v747_v12 = vadd.f32 %v746_v10, %v1343_v27 }
 0x54e   :  { %779 = vst [vmem:[#allocation11 + $0x28] sm:$0xff] %v747_v12 }
 0x553   :  { %v749_v17 = vpop.f32.mrf.mxu1 }
 0x554   :  { %v750_v13 = vadd.f32 %v749_v17, %v1348_v32 }
 0x556   :  { %780 = vst [vmem:[#allocation11 + $0x30] sm:$0xff] %v750_v13 }
 0x55b   :  { %v751_v18 = vpop.f32.mrf.mxu1 }
 0x55c   :  { %v752_v20 = vadd.f32 %v751_v18, %v1351_v33 }
 0x55e   :  { %781 = vst [vmem:[#allocation11 + $0x38] sm:$0xff] %v752_v20 }
 0x563   :  { %v754_v19 = vpop.f32.mrf.mxu1 }
 0x564   :  { %v755_v21 = vadd.f32 %v754_v19, %v1383_v8 }
 0x566   :  { %782 = vst [vmem:[#allocation11 + $0x40] sm:$0xff] %v755_v21 }
 0x56b   :  { %v756_v23 = vpop.f32.mrf.mxu1 }
 0x56c   :  { %v757_v26 = vadd.f32 %v756_v23, %v1379_v5 }
 0x56e   :  { %783 = vst [vmem:[#allocation11 + $0x48] sm:$0xff] %v757_v26 }
 0x573   :  { %v759_v37 = vpop.f32.mrf.mxu1 }
 0x574   :  { %v760_v27 = vadd.f32 %v759_v37, %v1375_v62 }
 0x576   :  { %784 = vst [vmem:[#allocation11 + $0x50] sm:$0xff] %v760_v27 }
 0x57b   :  { %v761_v24 = vpop.f32.mrf.mxu1 }
 0x57c   :  { %v762_v32 = vadd.f32 %v761_v24, %v1371_v63 }
 0x57e   :  { %785 = vst [vmem:[#allocation11 + $0x58] sm:$0xff] %v762_v32 }
 0x583   :  { %v764_v38 = vpop.f32.mrf.mxu1 }
 0x584   :  { %v765_v33 = vadd.f32 %v764_v38, %v1367_v58 }
 0x586   :  { %786 = vst [vmem:[#allocation11 + $0x60] sm:$0xff] %v765_v33 }
 0x58b   :  { %v766_v25 = vpop.f32.mrf.mxu1 }
 0x58c   :  { %v767_v8 = vadd.f32 %v766_v25, %v1362_v55 }
 0x58e   :  { %787 = vst [vmem:[#allocation11 + $0x68] sm:$0xff] %v767_v8 }
 0x593   :  { %v769_v29 = vpop.f32.mrf.mxu1 }
 0x594   :  { %v770_v5 = vadd.f32 %v769_v29, %v1356_v51 }
 0x596   :  { %788 = vst [vmem:[#allocation11 + $0x70] sm:$0xff] %v770_v5 }
 0x59b   :  { %v771_v63 = vpop.f32.mrf.mxu1 }
 0x59c   :  { %v772_v62 = vadd.f32 %v771_v63, %v1359_v52 }
 0x59e   :  { %789 = vst [vmem:[#allocation11 + $0x78] sm:$0xff] %v772_v62 }
 0x59f   :  { %802 = dma.vmem_to_hbm [thread:$0]  %s795_s13, 2048, %s797_s16, [#allocation4], %s1152_s10, %s1152_s10, %s1153_s11  }
 0x5a0   :  { %1149 = dma.done.wait [#allocation4], 2048  }
 0x5a1   :  { %1150 = vsyncadd [#allocation4], 4294965248 }
 0x5a2   :  { %807 = vsyncpa [#allocation3], 1 }
 0x5a3   :  { %808 = vsyncpa [#allocation6], 1 }
 0x5a4   :  { %809 = vsyncpa [#allocation9], 1 }
 0x5a5   :  { %810 = vsyncpa [#allocation4], 1 }

</bundles_post_ra>
